<compile_context>
chip_gen: v7x
topology: tpu7x:2x2x1
jax: 0.10.0
libtpu: 0.0.40
codegen_flags: <defaults>
</compile_context>

<pallas_src>
import functools

import jax
import jax.numpy as jnp
from jax.experimental import pallas as pl
from jax.experimental.pallas import tpu as pltpu


# ----------------------------- kernel ---------------------------------------

def resblock_kernel(block_length, x_ref, *refs):
    """refs = (w_0..w_{L-1}, b_0..b_{L-1}, out_ref)."""
    w_refs = refs[:block_length]
    b_refs = refs[block_length:2 * block_length]
    out_ref = refs[2 * block_length]

    x_in = x_ref[...]                                   # (TB, H) f32
    h = x_in
    for i in range(block_length):
        w = w_refs[i][...].astype(jnp.bfloat16)         # bf16 MXU operand
        acc = jnp.dot(h.astype(jnp.bfloat16), w,
                      preferred_element_type=jnp.float32)   # f32 accumulate
        h = jnp.maximum(acc + b_refs[i][...], 0.0)          # f32 VPU math
    out_ref[...] = (x_in + h).astype(out_ref.dtype)         # residual add


# ----------------------------- wrapper ---------------------------------------

def resblock_forward(x, weights, biases, *, block_tile=128):
    """x: (B, H) f32; weights[i]: (H, H) (in, out); biases[i]: (1, H)."""
    B, H = x.shape
    L = len(weights)

    TB = min(block_tile, B)
    if TB < B:
        # keep the sublane-tiling constraint (multiple of 8) for partial tiles
        TB = max(8, (TB // 8) * 8)
    grid = (pl.cdiv(B, TB),)

    x_spec = pl.BlockSpec((TB, H), lambda i: (i, 0))
    w_spec = pl.BlockSpec((H, H), lambda i: (0, 0))      # VMEM-resident
    b_spec = pl.BlockSpec((1, H), lambda i: (0, 0))      # VMEM-resident
    out_spec = pl.BlockSpec((TB, H), lambda i: (i, 0))

    cost = pl.CostEstimate(
        flops=2 * B * L * H * H,
        transcendentals=0,
        bytes_accessed=4 * (2 * B * H + L * (H * H + H)),
    )

    kernel = functools.partial(resblock_kernel, L)
    return pl.pallas_call(
        kernel,
        out_shape=jax.ShapeDtypeStruct((B, H), jnp.float32),
        grid=grid,
        in_specs=[x_spec] + [w_spec] * L + [b_spec] * L,
        out_specs=out_spec,
        compiler_params=pltpu.CompilerParams(
            dimension_semantics=("parallel",),
            vmem_limit_bytes=32 * 1024 * 1024,
        ),
        cost_estimate=cost,
    )(x, *weights, *biases)


# ----------------------------- params / reference ----------------------------

def init_resblock_params(key, h_nodes, block_length):
    """Matches PyTorch __init__: xavier_uniform_ weights, default Linear bias."""
    weights, biases = [], []
    for _ in range(block_length):
        key, kw, kb = jax.random.split(key, 3)
        bound_w = (6.0 / (h_nodes + h_nodes)) ** 0.5            # xavier uniform
        w = jax.random.uniform(kw, (h_nodes, h_nodes), jnp.float32,
                               -bound_w, bound_w)               # stored (in, out)
        bound_b = 1.0 / (h_nodes ** 0.5)                        # torch default
        b = jax.random.uniform(kb, (1, h_nodes), jnp.float32,
                               -bound_b, bound_b)
        weights.append(w)
        biases.append(b)
    return weights, biases


def resblock_reference(x, weights, biases, *, bf16_matmul):
    h = x
    for w, b in zip(weights, biases):
        if bf16_matmul:
            y = jnp.dot(h.astype(jnp.bfloat16), w.astype(jnp.bfloat16),
                        preferred_element_type=jnp.float32) + b
        else:
            y = h @ w + b
        h = jax.nn.relu(y)
    return x + h


# ----------------------------- main ------------------------------------------

if __name__ == "__main__":
    h_nodes, block_length = 64, 2
    batch, block_tile = 256, 128        # 2 grid steps -> exercises pipelining

    key = jax.random.PRNGKey(0)
    key, kx = jax.random.split(key)
    x = jax.random.normal(kx, (batch, h_nodes), jnp.float32)

    weights, biases = init_resblock_params(key, h_nodes, block_length)

    out = resblock_forward(x, weights, biases, block_tile=block_tile)
    out = jax.block_until_ready(out)

    ref_mxu = resblock_reference(x, weights, biases, bf16_matmul=True)
    ref_f32 = resblock_reference(x, weights, biases, bf16_matmul=False)

    assert out.shape == (batch, h_nodes)
    # matches the bf16-operand / f32-accumulate math the kernel performs
    assert jnp.allclose(out, ref_mxu, atol=1e-4, rtol=1e-4)
    # and stays close to the full-f32 PyTorch-semantics forward
    assert jnp.allclose(out, ref_f32, atol=5e-2, rtol=5e-2)

    print("KERNEL_OK")
</pallas_src>

<mosaic_0001>
module attributes {stable_mosaic.version = 11 : i64} {
  func.func @resblock_kernel(%arg0: i32, %arg1: memref<128x64xf32, #tpu.memory_space<vmem>>, %arg2: memref<64x64xf32, #tpu.memory_space<vmem>>, %arg3: memref<64x64xf32, #tpu.memory_space<vmem>>, %arg4: memref<1x64xf32, #tpu.memory_space<vmem>>, %arg5: memref<1x64xf32, #tpu.memory_space<vmem>>, %arg6: memref<128x64xf32, #tpu.memory_space<vmem>>) attributes {dimension_semantics = [#tpu.dimension_semantics<parallel>], iteration_bounds = array<i64: 2>, scalar_prefetch = 0 : i64, scratch_operands = 0 : i64, tpu.core_type = #tpu.core_type<tc>, window_params = [{transform_indices = @transform_0, window_bounds = array<i64: 128, 64>}, {pipeline_mode = #tpu.pipeline_mode<synchronous>, transform_indices = @transform_1, window_bounds = array<i64: 64, 64>}, {pipeline_mode = #tpu.pipeline_mode<synchronous>, transform_indices = @transform_2, window_bounds = array<i64: 64, 64>}, {pipeline_mode = #tpu.pipeline_mode<synchronous>, transform_indices = @transform_3, window_bounds = array<i64: 1, 64>}, {pipeline_mode = #tpu.pipeline_mode<synchronous>, transform_indices = @transform_4, window_bounds = array<i64: 1, 64>}, {transform_indices = @transform_5, window_bounds = array<i64: 128, 64>}]} {
    %c0 = arith.constant 0 : index
    %c0_0 = arith.constant 0 : index
    %0 = vector.load %arg1[%c0, %c0_0] : memref<128x64xf32, #tpu.memory_space<vmem>>, vector<128x64xf32>
    %c0_1 = arith.constant 0 : index
    %c0_2 = arith.constant 0 : index
    %1 = vector.load %arg2[%c0_1, %c0_2] : memref<64x64xf32, #tpu.memory_space<vmem>>, vector<64x64xf32>
    %2 = arith.truncf %1 : vector<64x64xf32> to vector<64x64xbf16>
    %3 = arith.truncf %0 : vector<128x64xf32> to vector<128x64xbf16>
    %cst = arith.constant dense<0.000000e+00> : vector<128x64xf32>
    %4 = tpu.matmul %3, %2, %cst {dimension_numbers = #tpu.dot_dimension_numbers<[1], [0], [0], [1], [0, 0, 1, 1], [], []>} : vector<128x64xbf16>, vector<64x64xbf16>, vector<128x64xf32> -> vector<128x64xf32>
    %c0_3 = arith.constant 0 : index
    %c0_4 = arith.constant 0 : index
    %5 = vector.load %arg4[%c0_3, %c0_4] : memref<1x64xf32, #tpu.memory_space<vmem>>, vector<1x64xf32>
    %6 = vector.broadcast %5 : vector<1x64xf32> to vector<128x64xf32>
    %7 = arith.addf %4, %6 : vector<128x64xf32>
    %cst_5 = arith.constant 0.000000e+00 : f32
    %8 = vector.broadcast %cst_5 : f32 to vector<128x64xf32>
    %9 = arith.maximumf %7, %8 : vector<128x64xf32>
    %c0_6 = arith.constant 0 : index
    %c0_7 = arith.constant 0 : index
    %10 = vector.load %arg3[%c0_6, %c0_7] : memref<64x64xf32, #tpu.memory_space<vmem>>, vector<64x64xf32>
    %11 = arith.truncf %10 : vector<64x64xf32> to vector<64x64xbf16>
    %12 = arith.truncf %9 : vector<128x64xf32> to vector<128x64xbf16>
    %cst_8 = arith.constant dense<0.000000e+00> : vector<128x64xf32>
    %13 = tpu.matmul %12, %11, %cst_8 {dimension_numbers = #tpu.dot_dimension_numbers<[1], [0], [0], [1], [0, 0, 1, 1], [], []>} : vector<128x64xbf16>, vector<64x64xbf16>, vector<128x64xf32> -> vector<128x64xf32>
    %c0_9 = arith.constant 0 : index
    %c0_10 = arith.constant 0 : index
    %14 = vector.load %arg5[%c0_9, %c0_10] : memref<1x64xf32, #tpu.memory_space<vmem>>, vector<1x64xf32>
    %15 = vector.broadcast %14 : vector<1x64xf32> to vector<128x64xf32>
    %16 = arith.addf %13, %15 : vector<128x64xf32>
    %cst_11 = arith.constant 0.000000e+00 : f32
    %17 = vector.broadcast %cst_11 : f32 to vector<128x64xf32>
    %18 = arith.maximumf %16, %17 : vector<128x64xf32>
    %19 = arith.addf %0, %18 : vector<128x64xf32>
    %c0_12 = arith.constant 0 : index
    %c0_13 = arith.constant 0 : index
    %20 = vector.load %arg6[%c0_12, %c0_13] : memref<128x64xf32, #tpu.memory_space<vmem>>, vector<128x64xf32>
    tpu.vector_store %arg6[%c0_12, %c0_13], %19 {strides = array<i32>} : memref<128x64xf32, #tpu.memory_space<vmem>>, vector<128x64xf32>,
    return
  }
  func.func @transform_0(%arg0: i32) -> (i32, i32) {
    %c0_i32 = arith.constant 0 : i32
    %c0_i32_0 = arith.constant 0 : i32
    return %arg0, %c0_i32 : i32, i32
  }
  func.func @transform_1(%arg0: i32) -> (i32, i32) {
    %c0_i32 = arith.constant 0 : i32
    %c0_i32_0 = arith.constant 0 : i32
    %c0_i32_1 = arith.constant 0 : i32
    return %c0_i32, %c0_i32_0 : i32, i32
  }
  func.func @transform_2(%arg0: i32) -> (i32, i32) {
    %c0_i32 = arith.constant 0 : i32
    %c0_i32_0 = arith.constant 0 : i32
    %c0_i32_1 = arith.constant 0 : i32
    return %c0_i32, %c0_i32_0 : i32, i32
  }
  func.func @transform_3(%arg0: i32) -> (i32, i32) {
    %c0_i32 = arith.constant 0 : i32
    %c0_i32_0 = arith.constant 0 : i32
    %c0_i32_1 = arith.constant 0 : i32
    return %c0_i32, %c0_i32_0 : i32, i32
  }
  func.func @transform_4(%arg0: i32) -> (i32, i32) {
    %c0_i32 = arith.constant 0 : i32
    %c0_i32_0 = arith.constant 0 : i32
    %c0_i32_1 = arith.constant 0 : i32
    return %c0_i32, %c0_i32_0 : i32, i32
  }
  func.func @transform_5(%arg0: i32) -> (i32, i32) {
    %c0_i32 = arith.constant 0 : i32
    %c0_i32_0 = arith.constant 0 : i32
    return %arg0, %c0_i32 : i32, i32
  }
}

</mosaic_0001>

<bundles_post_ra>
// kernel: tpu_custom_call.1
= control target key start
LH: loop header
LB: loop body
LE: loop exit
PB: predicated region body
PF: predicated region fallthrough
CT: control target
= control target key end

     0   :  { %s809_s18 = smov 0   ;;  %s1037_s0 = inlined_call_operand.vmem [shape: f32[256,64], index: 0, kind: input, shape index: {}]   ;;  %s1038_s1 = inlined_call_operand.vmem [shape: f32[64,64], index: 1, kind: input, shape index: {}]   ;;  %s1039_s2 = inlined_call_operand.vmem [shape: f32[64,64], index: 2, kind: input, shape index: {}]   ;;  %s1040_s3 = inlined_call_operand.vmem [shape: f32[1,64], index: 3, kind: input, shape index: {}]   ;;  %s1041_s4 = inlined_call_operand.vmem [shape: f32[1,64], index: 4, kind: input, shape index: {}]   ;;  %s1042_s5 = inlined_call_operand.vmem [shape: f32[256,64], index: 5, kind: output, shape index: {}]  }
   0x1 LB: > { %s662_s19 = sadd.s32 4294967295, %s777_s18   ;;  %p666_p0 = scmp.ge.s32.totalorder %s777_s18, 1  ;;  %s777_s18 = sphi %s809_s18, %s15_s18  }
   0x2   : > { %p188_p1 = scmp.lt.s32.totalorder %s777_s18, 3 }
   0x4   : > { %p189_p2 = pnand %p666_p0, %p188_p1 }
   0x5   : > { %v245_v0 = vld [vmem:[%s1038_s1] sm:$0xff] (!%p189_p2)  ;;  %v246_v1 = vld [vmem:[%s1038_s1 + $0x8] sm:$0xff] (!%p189_p2)  ;;  %v247_v2 = vld [vmem:[%s1038_s1 + $0x10] sm:$0xff] (!%p189_p2)  ;;  %s667_s26 = sshll.u32 (!%p189_p2), %s662_s19, 4  ;;  %vm272_vm0 = vcmask (!%p189_p2), 523264  }
   0x6   : > { %192 = sbr.rel (%p189_p2) target bundleno = 492 (0x1ec), region = 40  ;;  %v253_v3 = vpack.c.bf16 (!%p189_p2), %v246_v1, %v245_v0  ;;  %v248_v4 = vld [vmem:[%s1038_s1 + $0x18] sm:$0xff] (!%p189_p2)  ;;  %p217_p3 = scmp.lt.s32.totalorder (!%p189_p2), %s667_s26, 31  ;;  %v249_v6 = vld [vmem:[%s1038_s1 + $0x20] sm:$0xff] (!%p189_p2)  ;;  %v250_v7 = vld [vmem:[%s1038_s1 + $0x28] sm:$0xff] (!%p189_p2) }
   0x7   : > { %v254_v5 = vpack.c.bf16 (!%p189_p2), %v248_v4, %v247_v2  ;;  %v410_v8 = vld [vmem:[%s1039_s2] sm:$0xff] (!%p189_p2)  ;;  %v411_v9 = vld [vmem:[%s1039_s2 + $0x8] sm:$0xff] (!%p189_p2)  ;;  %v412_v10 = vld [vmem:[%s1039_s2 + $0x10] sm:$0xff] (!%p189_p2)  ;;  %v255_v14 = vpack.c.bf16 (!%p189_p2), %v250_v7, %v249_v6 }
   0x8   : > { %715 = vmatprep.subr.bf16.mxu0 (!%p189_p2), %v253_v3  ;;  %v413_v11 = vld [vmem:[%s1039_s2 + $0x18] sm:$0xff] (!%p189_p2)  ;;  %v418_v12 = vpack.c.bf16 (!%p189_p2), %v411_v9, %v410_v8  ;;  %v251_v15 = vld [vmem:[%s1038_s1 + $0x30] sm:$0xff] (!%p189_p2)  ;;  %v414_v42 = vld [vmem:[%s1039_s2 + $0x20] sm:$0xff] (!%p189_p2) }
   0x9   : > { %716 = vmatpush3.bf16.msra.mxu0 (!%p189_p2), %v253_v3  ;;  %v419_v13 = vpack.c.bf16 (!%p189_p2), %v413_v11, %v412_v10  ;;  %v252_v16 = vld [vmem:[%s1038_s1 + $0x38] sm:$0xff] (!%p189_p2)  ;;  %v415_v43 = vld [vmem:[%s1039_s2 + $0x28] sm:$0xff] (!%p189_p2)  ;;  %v416_v45 = vld [vmem:[%s1039_s2 + $0x30] sm:$0xff] (!%p189_p2) }
   0xa   : > { %717 = vmatprep.subr.bf16.mxu0 (!%p189_p2), %v254_v5  ;;  %739 = vmatprep.subr.bf16.mxu1 (!%p189_p2), %v418_v12  ;;  %v256_v20 = vpack.c.bf16 (!%p189_p2), %v252_v16, %v251_v15  ;;  %v420_v44 = vpack.c.bf16 (!%p189_p2), %v415_v43, %v414_v42  ;;  %v417_v46 = vld [vmem:[%s1039_s2 + $0x38] sm:$0xff] (!%p189_p2)  ;;  %v671_v48 = vld [vmem:[%s1040_s3] ss:$0 sm:$0xff] (!%p189_p2) }
   0xb   : > { %740 = vmatpush3.bf16.msra.mxu1 (!%p189_p2), %v418_v12  ;;  %v421_v47 = vpack.c.bf16 (!%p189_p2), %v417_v46, %v416_v45 }
   0xc   : > { %741 = vmatprep.subr.bf16.mxu1 (!%p189_p2), %v419_v13 }
   0xd   : > { %s1044_s26 = smov (!%p217_p3, %s667_s26), 31  ;;  %718 = vmatpush3.bf16.msra.mxu0 %v254_v5 }
   0xe   : > { %s668_s16 = sshll.u32 %s1044_s26, 3  ;;  %719 = vmatprep.subr.bf16.mxu0 %v255_v14 }
   0xf   : > { %s861_s24 = scalar_lea.vmem %s1037_s0, %s668_s16  ;;  %742 = vmatpush3.bf16.msra.mxu1 %v419_v13  ;;  %s971_s15 = scalar_lea.vmem %s1042_s5, %s668_s16 }
  0x10   : > { %v864_v17 = vld [vmem:[%s861_s24] sm:$0xff]  ;;  %v867_v18 = vld [vmem:[%s861_s24 + $0x8] sm:$0xff]  ;;  %v873_v21 = vld [vmem:[%s861_s24 + $0x10] sm:$0xff]  ;;  %743 = vmatprep.subr.bf16.mxu1 %v420_v44 }
  0x11   : > { %v257_v19 = vpack.c.bf16 %v867_v18, %v864_v17  ;;  %720 = vmatpush3.bf16.msra.mxu0 %v255_v14  ;;  %v876_v22 = vld [vmem:[%s861_s24 + $0x18] sm:$0xff]  ;;  %v879_v23 = vld [vmem:[%s861_s24 + $0x20] sm:$0xff]  ;;  %v882_v24 = vld [vmem:[%s861_s24 + $0x28] sm:$0xff] }
  0x12   : > { %721 = vmatprep.subr.bf16.mxu0 %v256_v20  ;;  %v258_v25 = vpack.c.bf16 %v876_v22, %v873_v21  ;;  %v259_v26 = vpack.c.bf16 %v882_v24, %v879_v23  ;;  %v891_v27 = vld [vmem:[%s861_s24 + $0x30] sm:$0xff]  ;;  %v894_v28 = vld [vmem:[%s861_s24 + $0x38] sm:$0xff]  ;;  %v897_v29 = vld [vmem:[%s861_s24 + $0x40] sm:$0xff] }
  0x13   : > { %723 = vmatprep.mubr.msk.bf16.mxu0 %vm272_vm0, %v257_v19  ;;  %v900_v30 = vld [vmem:[%s861_s24 + $0x48] sm:$0xff]  ;;  %v260_v31 = vpack.c.bf16 %v894_v28, %v891_v27  ;;  %v909_v33 = vld [vmem:[%s861_s24 + $0x50] sm:$0xff]  ;;  %v912_v34 = vld [vmem:[%s861_s24 + $0x58] sm:$0xff]  ;;  %744 = vmatpush3.bf16.msra.mxu1 %v420_v44 }
  0x14   : > { %v261_v32 = vpack.c.bf16 %v900_v30, %v897_v29  ;;  %v915_v35 = vld [vmem:[%s861_s24 + $0x60] sm:$0xff]  ;;  %v918_v36 = vld [vmem:[%s861_s24 + $0x68] sm:$0xff]  ;;  %v262_v37 = vpack.c.bf16 %v912_v34, %v909_v33  ;;  %v927_v39 = vld [vmem:[%s861_s24 + $0x70] sm:$0xff]  ;;  %745 = vmatprep.subr.bf16.mxu1 %v421_v47 }
  0x15   : > { %722 = vmatpush3.bf16.msra.mxu0 %v256_v20  ;;  %v263_v38 = vpack.c.bf16 %v918_v36, %v915_v35  ;;  %v930_v40 = vld [vmem:[%s861_s24 + $0x78] sm:$0xff] }
  0x16   : > { %v264_v41 = vpack.c.bf16 %v930_v40, %v927_v39 }
  0x17   : > { %746 = vmatpush3.bf16.msra.mxu1 %v421_v47 }
  0x18   : > { %724 = vmatmul.mubr.msk.bf16.vlgmr.msra.gmra.mrb[0].mxu0 %vm272_vm0, %v258_v25 }
  0x19   : > { %727 = vmatprep.mubr.msk.bf16.mxu0 %vm272_vm0, %v259_v26 }
  0x20   : > { %728 = vmatmul.mubr.msk.bf16.gmra.mrb[4].mxu0 %vm272_vm0, %v260_v31 }
  0x21   : > { %731 = vmatprep.mubr.msk.bf16.mxu0 %vm272_vm0, %v261_v32 }
  0x28   : > { %732 = vmatmul.mubr.msk.bf16.gmra.mrb[8].mxu0 %vm272_vm0, %v262_v37 }
  0x29   : > { %735 = vmatprep.mubr.msk.bf16.mxu0 %vm272_vm0, %v263_v38 }
  0x30   : > { %736 = vmatmul.mubr.msk.bf16.gmra.mrb[12].mxu0 %vm272_vm0, %v264_v41 }
  0xeb   : > { %v725_v49 = vpop.f32.mrb[0].mxu0 }
  0xec   : > { %v340_v50 = vadd.f32 %v725_v49, %v671_v48  ;;  %v331_v51 = vpop.f32.mrb[1].mxu0 }
  0xed   : > { %v332_v52 = vadd.f32 %v671_v48, %v331_v51  ;;  %v726_v53 = vpop.f32.mrb[2].mxu0 }
  0xee   : > { %v343_v54 = vadd.f32 %v726_v53, %v671_v48  ;;  %v334_v55 = vpop.f32.mrb[3].mxu0  ;;  %v396_v57 = vmax.f32 %v340_v50, 0.0 }
  0xef   : > { %v335_v56 = vadd.f32 %v671_v48, %v334_v55  ;;  %v394_v59 = vmax.f32 %v332_v52, 0.0 }
  0xf0   : > { %v397_v58 = vmax.f32 %v343_v54, 0.0 }
  0xf1   : > { %v395_v60 = vmax.f32 %v335_v56, 0.0 }
  0xf2   : > { %v423_v61 = vpack.c.bf16 %v397_v58, %v396_v57  ;;  %v961_v58 = vld [vmem:[%s1041_s4] ss:$0 sm:$0xff] }
  0xf3   : > { %v729_v62 = vpop.f32.mrb[4].mxu0  ;;  %v422_v63 = vpack.c.bf16 %v395_v60, %v394_v59 }
  0xf4   : > { %v356_v0 = vadd.f32 %v729_v62, %v671_v48  ;;  %v347_v1 = vpop.f32.mrb[5].mxu0 }
  0xf5   : > { %v348_v2 = vadd.f32 %v671_v48, %v347_v1  ;;  %v730_v3 = vpop.f32.mrb[6].mxu0  ;;  %747 = vmatprep.mubr.msk.bf16.mxu1 %vm272_vm0, %v422_v63 }
  0xf6   : > { %v359_v4 = vadd.f32 %v730_v3, %v671_v48  ;;  %v350_v5 = vpop.f32.mrb[7].mxu0  ;;  %748 = vmatmul.mubr.msk.bf16.vlgmr.msra.gmra.mrb[0].mxu1 %vm272_vm0, %v423_v61  ;;  %v400_v7 = vmax.f32 %v356_v0, 0.0 }
  0xf7   : > { %v351_v6 = vadd.f32 %v671_v48, %v350_v5  ;;  %v398_v9 = vmax.f32 %v348_v2, 0.0 }
  0xf8   : > { %v401_v8 = vmax.f32 %v359_v4, 0.0 }
  0xf9   : > { %v399_v10 = vmax.f32 %v351_v6, 0.0 }
  0xfa   : > { %v425_v11 = vpack.c.bf16 %v401_v8, %v400_v7 }
  0xfb   : > { %v424_v12 = vpack.c.bf16 %v399_v10, %v398_v9  ;;  %v733_v13 = vpop.f32.mrb[8].mxu0 }
  0xfc   : > { %v372_v14 = vadd.f32 %v733_v13, %v671_v48  ;;  %v363_v15 = vpop.f32.mrb[9].mxu0 }
  0xfd   : > { %v364_v16 = vadd.f32 %v671_v48, %v363_v15  ;;  %v734_v19 = vpop.f32.mrb[10].mxu0  ;;  %751 = vmatprep.mubr.msk.bf16.mxu1 %vm272_vm0, %v424_v12 }
  0xfe   : > { %v375_v20 = vadd.f32 %v734_v19, %v671_v48  ;;  %v366_v25 = vpop.f32.mrb[11].mxu0  ;;  %752 = vmatmul.mubr.msk.bf16.gmra.mrb[4].mxu1 %vm272_vm0, %v425_v11  ;;  %v404_v31 = vmax.f32 %v372_v14, 0.0 }
  0xff   : > { %v367_v26 = vadd.f32 %v671_v48, %v366_v25  ;;  %v402_v37 = vmax.f32 %v364_v16, 0.0 }
 0x100   : > { %v405_v32 = vmax.f32 %v375_v20, 0.0 }
 0x101   : > { %v403_v38 = vmax.f32 %v367_v26, 0.0 }
 0x102   : > { %v427_v41 = vpack.c.bf16 %v405_v32, %v404_v31 }
 0x103   : > { %v426_v42 = vpack.c.bf16 %v403_v38, %v402_v37  ;;  %v737_v43 = vpop.f32.mrb[12].mxu0 }
 0x104   : > { %v388_v44 = vadd.f32 %v737_v43, %v671_v48  ;;  %v379_v45 = vpop.f32.mrb[13].mxu0 }
 0x105   : > { %v380_v46 = vadd.f32 %v671_v48, %v379_v45  ;;  %v738_v47 = vpop.f32.mrb[14].mxu0  ;;  %755 = vmatprep.mubr.msk.bf16.mxu1 %vm272_vm0, %v426_v42 }
 0x106   : > { %v391_v49 = vadd.f32 %v738_v47, %v671_v48  ;;  %v382_v50 = vpop.f32.mrb[15].mxu0  ;;  %756 = vmatmul.mubr.msk.bf16.gmra.mrb[8].mxu1 %vm272_vm0, %v427_v41  ;;  %v408_v52 = vmax.f32 %v388_v44, 0.0 }
 0x107   : > { %v383_v51 = vadd.f32 %v671_v48, %v382_v50  ;;  %v406_v54 = vmax.f32 %v380_v46, 0.0 }
 0x108   : > { %v409_v53 = vmax.f32 %v391_v49, 0.0 }
 0x109   : > { %v407_v55 = vmax.f32 %v383_v51, 0.0 }
 0x10a   : > { %v429_v56 = vpack.c.bf16 %v409_v53, %v408_v52 }
 0x10b   : > { %v428_v57 = vpack.c.bf16 %v407_v55, %v406_v54 }
 0x10d   : > { %759 = vmatprep.mubr.msk.bf16.mxu1 %vm272_vm0, %v428_v57 }
 0x10e   : > { %760 = vmatmul.mubr.msk.bf16.gmra.mrb[12].mxu1 %vm272_vm0, %v429_v56 }
 0x1c9   : > { %v749_v59 = vpop.f32.mrb[0].mxu1 }
 0x1ca   : > { %v504_v60 = vadd.f32 %v749_v59, %v961_v58  ;;  %v495_v48 = vpop.f32.mrb[1].mxu1 }
 0x1cb   : > { %v496_v61 = vadd.f32 %v961_v58, %v495_v48  ;;  %v750_v62 = vpop.f32.mrb[2].mxu1 }
 0x1cc   : > { %v560_v63 = vmax.f32 %v504_v60, 0.0  ;;  %v507_v0 = vadd.f32 %v750_v62, %v961_v58  ;;  %v498_v1 = vpop.f32.mrb[3].mxu1 }
 0x1cd   : > { %v558_v2 = vmax.f32 %v496_v61, 0.0  ;;  %v499_v3 = vadd.f32 %v961_v58, %v498_v1 }
 0x1ce   : > { %v576_v4 = vadd.f32 %v560_v63, %v873_v21  ;;  %v561_v5 = vmax.f32 %v507_v0, 0.0 }
 0x1cf   : > { %v574_v6 = vadd.f32 %v558_v2, %v864_v17  ;;  %v559_v7 = vmax.f32 %v499_v3, 0.0 }
 0x1d0   : > { %592 = vst.msk [vmem:[%s971_s15 + $0x10] sm:$0xff] %vm272_vm0, %v576_v4  ;;  %v577_v8 = vadd.f32 %v561_v5, %v876_v22 }
 0x1d1   : > { %590 = vst.msk [vmem:[%s971_s15] sm:$0xff] %vm272_vm0, %v574_v6  ;;  %v575_v9 = vadd.f32 %v559_v7, %v867_v18  ;;  %v753_v10 = vpop.f32.mrb[4].mxu1 }
 0x1d2   : > { %593 = vst.msk [vmem:[%s971_s15 + $0x18] sm:$0xff] %vm272_vm0, %v577_v8  ;;  %v520_v11 = vadd.f32 %v753_v10, %v961_v58  ;;  %v511_v21 = vpop.f32.mrb[5].mxu1 }
 0x1d3   : > { %591 = vst.msk [vmem:[%s971_s15 + $0x8] sm:$0xff] %vm272_vm0, %v575_v9  ;;  %v512_v17 = vadd.f32 %v961_v58, %v511_v21  ;;  %v754_v12 = vpop.f32.mrb[6].mxu1 }
 0x1d4   : > { %v564_v13 = vmax.f32 %v520_v11, 0.0  ;;  %v523_v22 = vadd.f32 %v754_v12, %v961_v58  ;;  %v514_v14 = vpop.f32.mrb[7].mxu1 }
 0x1d5   : > { %v562_v18 = vmax.f32 %v512_v17, 0.0  ;;  %v515_v15 = vadd.f32 %v961_v58, %v514_v14 }
 0x1d6   : > { %v580_v16 = vadd.f32 %v564_v13, %v891_v27  ;;  %v565_v19 = vmax.f32 %v523_v22, 0.0 }
 0x1d7   : > { %v578_v20 = vadd.f32 %v562_v18, %v879_v23  ;;  %v563_v25 = vmax.f32 %v515_v15, 0.0 }
 0x1d8   : > { %596 = vst.msk [vmem:[%s971_s15 + $0x30] sm:$0xff] %vm272_vm0, %v580_v16  ;;  %v581_v26 = vadd.f32 %v565_v19, %v894_v28 }
 0x1d9   : > { %594 = vst.msk [vmem:[%s971_s15 + $0x20] sm:$0xff] %vm272_vm0, %v578_v20  ;;  %v579_v31 = vadd.f32 %v563_v25, %v882_v24  ;;  %v757_v32 = vpop.f32.mrb[8].mxu1 }
 0x1da   : > { %597 = vst.msk [vmem:[%s971_s15 + $0x38] sm:$0xff] %vm272_vm0, %v581_v26  ;;  %v536_v37 = vadd.f32 %v757_v32, %v961_v58  ;;  %v527_v27 = vpop.f32.mrb[9].mxu1 }
 0x1db   : > { %595 = vst.msk [vmem:[%s971_s15 + $0x28] sm:$0xff] %vm272_vm0, %v579_v31  ;;  %v528_v23 = vadd.f32 %v961_v58, %v527_v27  ;;  %v758_v38 = vpop.f32.mrb[10].mxu1 }
 0x1dc   : > { %v568_v41 = vmax.f32 %v536_v37, 0.0  ;;  %v539_v28 = vadd.f32 %v758_v38, %v961_v58  ;;  %v530_v42 = vpop.f32.mrb[11].mxu1 }
 0x1dd   : > { %v566_v24 = vmax.f32 %v528_v23, 0.0  ;;  %v531_v43 = vadd.f32 %v961_v58, %v530_v42 }
 0x1de   : > { %v584_v44 = vadd.f32 %v568_v41, %v909_v33  ;;  %v569_v45 = vmax.f32 %v539_v28, 0.0 }
 0x1df   : > { %v582_v46 = vadd.f32 %v566_v24, %v897_v29  ;;  %v567_v47 = vmax.f32 %v531_v43, 0.0 }
 0x1e0   : > { %600 = vst.msk [vmem:[%s971_s15 + $0x50] sm:$0xff] %vm272_vm0, %v584_v44  ;;  %v585_v49 = vadd.f32 %v569_v45, %v912_v34 }
 0x1e1   : > { %598 = vst.msk [vmem:[%s971_s15 + $0x40] sm:$0xff] %vm272_vm0, %v582_v46  ;;  %v583_v50 = vadd.f32 %v567_v47, %v900_v30  ;;  %v761_v51 = vpop.f32.mrb[12].mxu1 }
 0x1e2   : > { %601 = vst.msk [vmem:[%s971_s15 + $0x58] sm:$0xff] %vm272_vm0, %v585_v49  ;;  %v552_v52 = vadd.f32 %v761_v51, %v961_v58  ;;  %v543_v33 = vpop.f32.mrb[13].mxu1 }
 0x1e3   : > { %599 = vst.msk [vmem:[%s971_s15 + $0x48] sm:$0xff] %vm272_vm0, %v583_v50  ;;  %v544_v29 = vadd.f32 %v961_v58, %v543_v33  ;;  %v762_v53 = vpop.f32.mrb[14].mxu1 }
 0x1e4   : > { %v572_v34 = vmax.f32 %v552_v52, 0.0  ;;  %v555_v54 = vadd.f32 %v762_v53, %v961_v58  ;;  %v546_v55 = vpop.f32.mrb[15].mxu1 }
 0x1e5   : > { %v570_v30 = vmax.f32 %v544_v29, 0.0  ;;  %v547_v56 = vadd.f32 %v961_v58, %v546_v55 }
 0x1e6   : > { %v588_v57 = vadd.f32 %v572_v34, %v927_v39  ;;  %v573_v59 = vmax.f32 %v555_v54, 0.0 }
 0x1e7   : > { %v586_v60 = vadd.f32 %v570_v30, %v915_v35  ;;  %v571_v48 = vmax.f32 %v547_v56, 0.0 }
 0x1e8   : > { %604 = vst.msk [vmem:[%s971_s15 + $0x70] sm:$0xff] %vm272_vm0, %v588_v57  ;;  %v589_v61 = vadd.f32 %v573_v59, %v930_v40 }
 0x1e9   : > { %602 = vst.msk [vmem:[%s971_s15 + $0x60] sm:$0xff] %vm272_vm0, %v586_v60  ;;  %v587_v62 = vadd.f32 %v571_v48, %v918_v36 }
 0x1ea   : > { %605 = vst.msk [vmem:[%s971_s15 + $0x78] sm:$0xff] %vm272_vm0, %v589_v61 }
 0x1eb   : > { %603 = vst.msk [vmem:[%s971_s15 + $0x68] sm:$0xff] %vm272_vm0, %v587_v62 }
 0x1ec PF: > { %s15_s18 = sadd.s32 1, %s777_s18  }
 0x1ed   : > { %p12_p4 = scmp.ge.s32.totalorder %s15_s18, 4  }
 0x1ef   :  { %14 = sbr.rel (!%p12_p4) target bundleno = 1 (0x1), region = 70 }

</bundles_post_ra>
